<compile_context>
chip_gen: v7x
topology: tpu7x:2x2x1
jax: 0.10.0
libtpu: 0.0.40
codegen_flags: <defaults>
</compile_context>

<pallas_src>
import functools

import jax
import jax.numpy as jnp
from jax.experimental import pallas as pl
from jax.experimental.pallas import tpu as pltpu


def _mmnet_iid_linear_kernel(shatt_ref, rt_ref, hflat_ref, zt_ref, *, nr, nt):
    # shatt: (TB, NT)   rt: (TB, NR)   hflat: (TB, NR*NT) lane-dense   zt: (TB, NT)
    rt = rt_ref[...].astype(jnp.float32)           # (TB, NR)
    acc = shatt_ref[...].astype(jnp.float32)       # (TB, NT) f32 accumulator

    # zt[b, n] = shatt[b, n] + sum_r H[b, r, n] * rt[b, r]
    # Unrolled (NR is static, modest) accumulation: each step is a static
    # lane-slice read from the dense VMEM tile + a VPU multiply-add.  No
    # H-tile-sized broadcast temporary is materialized, keeping the input-side
    # VMEM footprint at exactly one (double-buffered) H tile.
    for r in range(nr):
        h_r = hflat_ref[:, r * nt:(r + 1) * nt].astype(jnp.float32)   # (TB, NT)
        acc = acc + h_r * rt[:, r:r + 1]

    zt_ref[...] = acc.astype(zt_ref.dtype)


def _round_up(x, m):
    return ((x + m - 1) // m) * m


def _pick_batch_tile(B, NR, NT):
    """Pad-aware, generation-aware batch-tile + scoped-VMEM-limit choice.

    Budgets the *padded* VMEM bytes of every double-buffered block (last dim
    rounded to 128 lanes, batch rows to 8 sublanes) against the chip's VMEM.
    """
    try:
        info = pltpu.get_tpu_info()
        vmem_cap = int(getattr(info, "vmem_capacity_bytes", 64 << 20))
    except Exception:  # no TPU info available at trace time -> assume smallest (v7x)
        vmem_cap = 64 << 20

    # Padded VMEM bytes per batch row (f32).
    h_row = _round_up(NR * NT, 128) * 4                               # dense H tile row
    small_row = (2 * _round_up(NT, 128) + _round_up(NR, 128)) * 4     # shatt + zt + rt rows

    # Keep one H buffer well under VMEM: double buffering doubles it and the
    # small operands / accumulator / compiler scratch need headroom too.
    per_buffer_budget = min(vmem_cap // 8, 12 << 20)
    tb = max(1, per_buffer_budget // h_row)

    if B >= 16:
        # Guarantee >= 2 grid steps so both v7x TensorCores get their own tiles
        # (harmless on single-TC v5e/v6e).
        tb = min(tb, (B + 1) // 2)

    if tb >= B:
        tb = B
    else:
        tb = max(8, (tb // 8) * 8)   # sublane-align partial-batch blocks
        tb = min(tb, B)

    tb_pad = _round_up(tb, 8)
    working_set = 2 * tb_pad * (h_row + small_row) + (2 << 20)        # 2x for double buffering
    vmem_limit = int(min(max(working_set, 16 << 20), int(vmem_cap * 0.9)))
    return tb, vmem_limit


def mmnet_iid_linear_forward(shatt, rt, features):
    """Pallas implementation of MMNet_iid_linear.forward.

    shatt: (B, NT) float32
    rt:    (B, NR) float32
    features: dict with 'H': (B, NR, NT) float32
    Returns (zt, {'W': W}) matching the PyTorch module.
    """
    H = features["H"]
    B, NT = shatt.shape
    NR = rt.shape[1]
    assert rt.shape[0] == B and H.shape == (B, NR, NT)

    # Lane-dense view of the dominant stream: contiguous row-major reshape,
    # so the kernel DMAs dense (TB, NR*NT) tiles instead of 8-lane-wide rows.
    H_flat = H.reshape(B, NR * NT)

    TB, vmem_limit = _pick_batch_tile(B, NR, NT)
    grid = (pl.cdiv(B, TB),)

    kernel = functools.partial(_mmnet_iid_linear_kernel, nr=NR, nt=NT)

    zt = pl.pallas_call(
        kernel,
        grid=grid,
        in_specs=[
            pl.BlockSpec((TB, NT), lambda b: (b, 0)),           # shatt
            pl.BlockSpec((TB, NR), lambda b: (b, 0)),           # rt
            pl.BlockSpec((TB, NR * NT), lambda b: (b, 0)),      # H (flat, lane-dense)
        ],
        out_specs=pl.BlockSpec((TB, NT), lambda b: (b, 0)),     # zt
        out_shape=jax.ShapeDtypeStruct((B, NT), shatt.dtype),
        compiler_params=pltpu.CompilerParams(
            dimension_semantics=("parallel",),                   # megacore sharding on v7x
            vmem_limit_bytes=vmem_limit,
        ),
    )(shatt, rt, H_flat)

    # W is a pure transpose of H.  Per the perf review we do NOT write it from
    # the kernel (that would double HBM traffic of a memory-bound op); the
    # module contract is kept with a lazy XLA transpose the consumer can fuse.
    # TODO(synk): downstream MMNet stages should read H with swapped indices
    # (einsum / index_map) instead of ever materializing W.
    W = jnp.swapaxes(H, 1, 2)

    return zt, {"W": W}


if __name__ == "__main__":
    # params: NT=4, NR=8, batch_size=2  ->  NT_dim = 8, NR_dim = 16
    params = {"NT": 4, "NR": 8, "batch_size": 2}
    B = params["batch_size"]
    NT_dim = 2 * params["NT"]
    NR_dim = 2 * params["NR"]

    key = jax.random.PRNGKey(0)
    k1, k2, k3 = jax.random.split(key, 3)
    shatt = jax.random.normal(k1, (B, NT_dim), dtype=jnp.float32)
    rt = jax.random.normal(k2, (B, NR_dim), dtype=jnp.float32)
    H = jax.random.normal(k3, (B, NR_dim, NT_dim), dtype=jnp.float32)

    zt, helper = mmnet_iid_linear_forward(shatt, rt, {"H": H})
    zt = jax.block_until_ready(zt)
    W = jax.block_until_ready(helper["W"])

    # Pure-JAX reference check.
    zt_ref = shatt + jnp.einsum("brn,br->bn", H, rt)
    W_ref = jnp.transpose(H, (0, 2, 1))
    assert zt.shape == (B, NT_dim) and W.shape == (B, NT_dim, NR_dim)
    assert jnp.allclose(zt, zt_ref, atol=1e-5, rtol=1e-5), "zt mismatch"
    assert jnp.allclose(W, W_ref), "W mismatch"

    print("KERNEL_OK")
</pallas_src>

<mosaic_0001>
module attributes {stable_mosaic.version = 11 : i64} {
  func.func @_mmnet_iid_linear_kernel(%arg0: i32, %arg1: memref<2x8xf32, #tpu.memory_space<vmem>>, %arg2: memref<2x16xf32, #tpu.memory_space<vmem>>, %arg3: memref<2x128xf32, #tpu.memory_space<vmem>>, %arg4: memref<2x8xf32, #tpu.memory_space<vmem>>) attributes {dimension_semantics = [#tpu.dimension_semantics<parallel>], iteration_bounds = array<i64: 1>, scalar_prefetch = 0 : i64, scratch_operands = 0 : i64, tpu.core_type = #tpu.core_type<tc>, window_params = [{transform_indices = @transform_0, window_bounds = array<i64: 2, 8>}, {transform_indices = @transform_1, window_bounds = array<i64: 2, 16>}, {transform_indices = @transform_2, window_bounds = array<i64: 2, 128>}, {transform_indices = @transform_3, window_bounds = array<i64: 2, 8>}]} {
    %c0 = arith.constant 0 : index
    %c0_0 = arith.constant 0 : index
    %0 = vector.load %arg2[%c0, %c0_0] : memref<2x16xf32, #tpu.memory_space<vmem>>, vector<2x16xf32>
    %c0_1 = arith.constant 0 : index
    %c0_2 = arith.constant 0 : index
    %1 = vector.load %arg1[%c0_1, %c0_2] : memref<2x8xf32, #tpu.memory_space<vmem>>, vector<2x8xf32>
    %c0_3 = arith.constant 0 : index
    %c0_4 = arith.constant 0 : index
    %2 = vector.load %arg3[%c0_3, %c0_4] : memref<2x128xf32, #tpu.memory_space<vmem>>, vector<2x8xf32>
    %3 = vector.extract_strided_slice %0 {offsets = [0, 0], sizes = [2, 1], strides = [1, 1]} : vector<2x16xf32> to vector<2x1xf32>
    %4 = vector.broadcast %3 : vector<2x1xf32> to vector<2x8xf32>
    %5 = arith.mulf %2, %4 : vector<2x8xf32>
    %6 = arith.addf %1, %5 : vector<2x8xf32>
    %c0_5 = arith.constant 0 : index
    %c8 = arith.constant 8 : index
    %7 = vector.load %arg3[%c0_5, %c8] : memref<2x128xf32, #tpu.memory_space<vmem>>, vector<2x8xf32>
    %8 = vector.extract_strided_slice %0 {offsets = [0, 1], sizes = [2, 1], strides = [1, 1]} : vector<2x16xf32> to vector<2x1xf32>
    %9 = vector.broadcast %8 : vector<2x1xf32> to vector<2x8xf32>
    %10 = arith.mulf %7, %9 : vector<2x8xf32>
    %11 = arith.addf %6, %10 : vector<2x8xf32>
    %c0_6 = arith.constant 0 : index
    %c16 = arith.constant 16 : index
    %12 = vector.load %arg3[%c0_6, %c16] : memref<2x128xf32, #tpu.memory_space<vmem>>, vector<2x8xf32>
    %13 = vector.extract_strided_slice %0 {offsets = [0, 2], sizes = [2, 1], strides = [1, 1]} : vector<2x16xf32> to vector<2x1xf32>
    %14 = vector.broadcast %13 : vector<2x1xf32> to vector<2x8xf32>
    %15 = arith.mulf %12, %14 : vector<2x8xf32>
    %16 = arith.addf %11, %15 : vector<2x8xf32>
    %c0_7 = arith.constant 0 : index
    %c24 = arith.constant 24 : index
    %17 = vector.load %arg3[%c0_7, %c24] : memref<2x128xf32, #tpu.memory_space<vmem>>, vector<2x8xf32>
    %18 = vector.extract_strided_slice %0 {offsets = [0, 3], sizes = [2, 1], strides = [1, 1]} : vector<2x16xf32> to vector<2x1xf32>
    %19 = vector.broadcast %18 : vector<2x1xf32> to vector<2x8xf32>
    %20 = arith.mulf %17, %19 : vector<2x8xf32>
    %21 = arith.addf %16, %20 : vector<2x8xf32>
    %c0_8 = arith.constant 0 : index
    %c32 = arith.constant 32 : index
    %22 = vector.load %arg3[%c0_8, %c32] : memref<2x128xf32, #tpu.memory_space<vmem>>, vector<2x8xf32>
    %23 = vector.extract_strided_slice %0 {offsets = [0, 4], sizes = [2, 1], strides = [1, 1]} : vector<2x16xf32> to vector<2x1xf32>
    %24 = vector.broadcast %23 : vector<2x1xf32> to vector<2x8xf32>
    %25 = arith.mulf %22, %24 : vector<2x8xf32>
    %26 = arith.addf %21, %25 : vector<2x8xf32>
    %c0_9 = arith.constant 0 : index
    %c40 = arith.constant 40 : index
    %27 = vector.load %arg3[%c0_9, %c40] : memref<2x128xf32, #tpu.memory_space<vmem>>, vector<2x8xf32>
    %28 = vector.extract_strided_slice %0 {offsets = [0, 5], sizes = [2, 1], strides = [1, 1]} : vector<2x16xf32> to vector<2x1xf32>
    %29 = vector.broadcast %28 : vector<2x1xf32> to vector<2x8xf32>
    %30 = arith.mulf %27, %29 : vector<2x8xf32>
    %31 = arith.addf %26, %30 : vector<2x8xf32>
    %c0_10 = arith.constant 0 : index
    %c48 = arith.constant 48 : index
    %32 = vector.load %arg3[%c0_10, %c48] : memref<2x128xf32, #tpu.memory_space<vmem>>, vector<2x8xf32>
    %33 = vector.extract_strided_slice %0 {offsets = [0, 6], sizes = [2, 1], strides = [1, 1]} : vector<2x16xf32> to vector<2x1xf32>
    %34 = vector.broadcast %33 : vector<2x1xf32> to vector<2x8xf32>
    %35 = arith.mulf %32, %34 : vector<2x8xf32>
    %36 = arith.addf %31, %35 : vector<2x8xf32>
    %c0_11 = arith.constant 0 : index
    %c56 = arith.constant 56 : index
    %37 = vector.load %arg3[%c0_11, %c56] : memref<2x128xf32, #tpu.memory_space<vmem>>, vector<2x8xf32>
    %38 = vector.extract_strided_slice %0 {offsets = [0, 7], sizes = [2, 1], strides = [1, 1]} : vector<2x16xf32> to vector<2x1xf32>
    %39 = vector.broadcast %38 : vector<2x1xf32> to vector<2x8xf32>
    %40 = arith.mulf %37, %39 : vector<2x8xf32>
    %41 = arith.addf %36, %40 : vector<2x8xf32>
    %c0_12 = arith.constant 0 : index
    %c64 = arith.constant 64 : index
    %42 = vector.load %arg3[%c0_12, %c64] : memref<2x128xf32, #tpu.memory_space<vmem>>, vector<2x8xf32>
    %43 = vector.extract_strided_slice %0 {offsets = [0, 8], sizes = [2, 1], strides = [1, 1]} : vector<2x16xf32> to vector<2x1xf32>
    %44 = vector.broadcast %43 : vector<2x1xf32> to vector<2x8xf32>
    %45 = arith.mulf %42, %44 : vector<2x8xf32>
    %46 = arith.addf %41, %45 : vector<2x8xf32>
    %c0_13 = arith.constant 0 : index
    %c72 = arith.constant 72 : index
    %47 = vector.load %arg3[%c0_13, %c72] : memref<2x128xf32, #tpu.memory_space<vmem>>, vector<2x8xf32>
    %48 = vector.extract_strided_slice %0 {offsets = [0, 9], sizes = [2, 1], strides = [1, 1]} : vector<2x16xf32> to vector<2x1xf32>
    %49 = vector.broadcast %48 : vector<2x1xf32> to vector<2x8xf32>
    %50 = arith.mulf %47, %49 : vector<2x8xf32>
    %51 = arith.addf %46, %50 : vector<2x8xf32>
    %c0_14 = arith.constant 0 : index
    %c80 = arith.constant 80 : index
    %52 = vector.load %arg3[%c0_14, %c80] : memref<2x128xf32, #tpu.memory_space<vmem>>, vector<2x8xf32>
    %53 = vector.extract_strided_slice %0 {offsets = [0, 10], sizes = [2, 1], strides = [1, 1]} : vector<2x16xf32> to vector<2x1xf32>
    %54 = vector.broadcast %53 : vector<2x1xf32> to vector<2x8xf32>
    %55 = arith.mulf %52, %54 : vector<2x8xf32>
    %56 = arith.addf %51, %55 : vector<2x8xf32>
    %c0_15 = arith.constant 0 : index
    %c88 = arith.constant 88 : index
    %57 = vector.load %arg3[%c0_15, %c88] : memref<2x128xf32, #tpu.memory_space<vmem>>, vector<2x8xf32>
    %58 = vector.extract_strided_slice %0 {offsets = [0, 11], sizes = [2, 1], strides = [1, 1]} : vector<2x16xf32> to vector<2x1xf32>
    %59 = vector.broadcast %58 : vector<2x1xf32> to vector<2x8xf32>
    %60 = arith.mulf %57, %59 : vector<2x8xf32>
    %61 = arith.addf %56, %60 : vector<2x8xf32>
    %c0_16 = arith.constant 0 : index
    %c96 = arith.constant 96 : index
    %62 = vector.load %arg3[%c0_16, %c96] : memref<2x128xf32, #tpu.memory_space<vmem>>, vector<2x8xf32>
    %63 = vector.extract_strided_slice %0 {offsets = [0, 12], sizes = [2, 1], strides = [1, 1]} : vector<2x16xf32> to vector<2x1xf32>
    %64 = vector.broadcast %63 : vector<2x1xf32> to vector<2x8xf32>
    %65 = arith.mulf %62, %64 : vector<2x8xf32>
    %66 = arith.addf %61, %65 : vector<2x8xf32>
    %c0_17 = arith.constant 0 : index
    %c104 = arith.constant 104 : index
    %67 = vector.load %arg3[%c0_17, %c104] : memref<2x128xf32, #tpu.memory_space<vmem>>, vector<2x8xf32>
    %68 = vector.extract_strided_slice %0 {offsets = [0, 13], sizes = [2, 1], strides = [1, 1]} : vector<2x16xf32> to vector<2x1xf32>
    %69 = vector.broadcast %68 : vector<2x1xf32> to vector<2x8xf32>
    %70 = arith.mulf %67, %69 : vector<2x8xf32>
    %71 = arith.addf %66, %70 : vector<2x8xf32>
    %c0_18 = arith.constant 0 : index
    %c112 = arith.constant 112 : index
    %72 = vector.load %arg3[%c0_18, %c112] : memref<2x128xf32, #tpu.memory_space<vmem>>, vector<2x8xf32>
    %73 = vector.extract_strided_slice %0 {offsets = [0, 14], sizes = [2, 1], strides = [1, 1]} : vector<2x16xf32> to vector<2x1xf32>
    %74 = vector.broadcast %73 : vector<2x1xf32> to vector<2x8xf32>
    %75 = arith.mulf %72, %74 : vector<2x8xf32>
    %76 = arith.addf %71, %75 : vector<2x8xf32>
    %c0_19 = arith.constant 0 : index
    %c120 = arith.constant 120 : index
    %77 = vector.load %arg3[%c0_19, %c120] : memref<2x128xf32, #tpu.memory_space<vmem>>, vector<2x8xf32>
    %78 = vector.extract_strided_slice %0 {offsets = [0, 15], sizes = [2, 1], strides = [1, 1]} : vector<2x16xf32> to vector<2x1xf32>
    %79 = vector.broadcast %78 : vector<2x1xf32> to vector<2x8xf32>
    %80 = arith.mulf %77, %79 : vector<2x8xf32>
    %81 = arith.addf %76, %80 : vector<2x8xf32>
    %c0_20 = arith.constant 0 : index
    %c0_21 = arith.constant 0 : index
    %82 = vector.load %arg4[%c0_20, %c0_21] : memref<2x8xf32, #tpu.memory_space<vmem>>, vector<2x8xf32>
    tpu.vector_store %arg4[%c0_20, %c0_21], %81 {strides = array<i32>} : memref<2x8xf32, #tpu.memory_space<vmem>>, vector<2x8xf32>,
    return
  }
  func.func @transform_0(%arg0: i32) -> (i32, i32) {
    %c0_i32 = arith.constant 0 : i32
    %c0_i32_0 = arith.constant 0 : i32
    return %arg0, %c0_i32 : i32, i32
  }
  func.func @transform_1(%arg0: i32) -> (i32, i32) {
    %c0_i32 = arith.constant 0 : i32
    %c0_i32_0 = arith.constant 0 : i32
    return %arg0, %c0_i32 : i32, i32
  }
  func.func @transform_2(%arg0: i32) -> (i32, i32) {
    %c0_i32 = arith.constant 0 : i32
    %c0_i32_0 = arith.constant 0 : i32
    return %arg0, %c0_i32 : i32, i32
  }
  func.func @transform_3(%arg0: i32) -> (i32, i32) {
    %c0_i32 = arith.constant 0 : i32
    %c0_i32_0 = arith.constant 0 : i32
    return %arg0, %c0_i32 : i32, i32
  }
}

</mosaic_0001>

<bundles_post_ra>
// kernel: tpu_custom_call.1
= control target key start
LH: loop header
LB: loop body
LE: loop exit
PB: predicated region body
PF: predicated region fallthrough
CT: control target
= control target key end

     0   :  { %8 = vsyncpa [#allocation3], 0  ;;  %s384_s0 = inlined_call_operand.hbm [shape: f32[2,8], index: 0, kind: input, shape index: {}]   ;;  %s385_s1 = inlined_call_operand.vmem [shape: f32[2,16], index: 1, kind: input, shape index: {}]   ;;  %s386_s2 = inlined_call_operand.vmem [shape: f32[2,128], index: 2, kind: input, shape index: {}]   ;;  %s387_s3 = inlined_call_operand.hbm [shape: f32[2,8], index: 3, kind: output, shape index: {}]  }
   0x1   :  { %9 = vsyncpa [#allocation4], 0  ;;  %s301_s12 = smov [#allocation2]   ;;  %s253_s16 = scalar_lea.hbm %s384_s0, 32 }
   0x2   :  { %s16_s13 = sshll.u32 %s301_s12, 4  ;;  %p254_p0 = scmp.ne.s32.totalorder %s384_s0, %s253_s16  ;;  %s17_s13 = int_to_ptr.vmem [resolvable:$true] %s16_s13 }
   0x3   :  { %p257_p1 = scmp.lt.u32.totalorder %s253_s16, %s384_s0 }
   0x5   :  { %p259_p2 = pnand %p257_p1, %p254_p0 }
   0x7   :  { %262 = shalt.err (!%p259_p2)
}
   0x8   :  { %s263_s21 = scalar_lea.vmem %s17_s13, 32  ;;  %p268_p4 = scmp.lt.s32.totalorder %s17_s13, %s17_s13 }
   0x9   :  { %p264_p3 = scmp.ne.s32.totalorder %s17_s13, %s263_s21  ;;  %p269_p5 = scmp.lt.s32.totalorder %s263_s21, %s263_s21 }
   0xb   :  { %p270_p6 = por %p269_p5, %p268_p4 }
   0xd   :  { %p271_p7 = pnand %p270_p6, %p264_p3 }
   0xf   :  { %274 = shalt.err (!%p271_p7)
}
  0x10   :  { %19 = dma.hbm_to_vmem [thread:$0]  %s384_s0, 32, %s17_s13, [#allocation3]  }
  0x11   :  { %297 = dma.done.wait [#allocation3], 32  }
  0x12   :  { %298 = vsyncadd [#allocation3], 4294967264  ;;  %v302_v0 = vmov 3   ;;  %v303_v1 = vmov 1   ;;  %v27_v2 = vld [vmem:[%s385_s1] sm:$0x3] }
  0x13   :  { %239 = vset.pattern.permute.xlu1 %v302_v0  ;;  %237 = vset.pattern.permute.xlu0 %v303_v1  ;;  %v304_v3 = vmov 4   ;;  %v305_v4 = vmov 2   ;;  %v306_v5 = vmov 5   ;;  %v307_v6 = vmov 6   ;;  %v29_v17 = vld [vmem:[%s386_s2] sm:$0x3] }
  0x14   :  { %58 = vperm.xlu1 %239, %v27_v2   ;;  %38 = vperm.xlu0 %237, %v27_v2   ;;  %v308_v7 = vmov 7   ;;  %v309_v8 = vmov 9   ;;  %v310_v9 = vmov 8   ;;  %v311_v10 = vmov 12   ;;  %s318_s26 = smov 120   ;;  %s319_s27 = smov 104  }
  0x15   :  { %v312_v11 = vmov 10   ;;  %v313_v12 = vmov 15   ;;  %v314_v13 = vmov 11   ;;  %v315_v14 = vmov 13   ;;  %s320_s28 = smov 112   ;;  %s321_s29 = smov 96  }
  0x16   :  { %v316_v15 = vmov 14   ;;  %v317_v16 = vmov 0   ;;  %s322_s2 = smov 88   ;;  %s323_s30 = smov 80   ;;  %v28_v50 = vld [vmem:[#allocation2] sm:$0x3] }
  0x17   :  { %s324_s4 = smov 72   ;;  %s325_s5 = smov 56   ;;  %vm187_vm0 = vcmask 58368  }
  0x18   :  { %240 = vset.pattern.permute.xlu1 %v304_v3  ;;  %238 = vset.pattern.permute.xlu0 %v305_v4  ;;  %s326_s6 = smov 64   ;;  %s327_s7 = smov 48  }
  0x19   :  { %68 = vperm.xlu1 %240, %v27_v2   ;;  %48 = vperm.xlu0 %238, %v27_v2   ;;  %s328_s8 = smov 32   ;;  %s329_s9 = smov 40  }
  0x1a   :  { %s330_s10 = smov 24   ;;  %s331_s11 = smov 8  }
  0x1b   :  { %s332_s12 = smov 16   ;;  %s333_s13 = smov [#allocation5]  }
  0x1c   :  { %s195_s14 = sshll.u32 %s333_s13, 4  ;;  %s196_s14 = int_to_ptr.vmem [resolvable:$true] %s195_s14 }
  0x1d   :  { %241 = vset.pattern.permute.xlu1 %v306_v5  ;;  %242 = vset.pattern.permute.xlu0 %v307_v6  ;;  %s275_s15 = scalar_lea.vmem %s196_s14, 32  ;;  %p280_p9 = scmp.lt.s32.totalorder %s196_s14, %s196_s14 }
  0x1e   :  { %78 = vperm.xlu1 %241, %v27_v2   ;;  %88 = vperm.xlu0 %242, %v27_v2   ;;  %p276_p8 = scmp.ne.s32.totalorder %s196_s14, %s275_s15  ;;  %p281_p10 = scmp.lt.s32.totalorder %s275_s15, %s275_s15 }
  0x20   :  { %p282_p11 = por %p281_p10, %p280_p9 }
  0x22   :  { %243 = vset.pattern.permute.xlu1 %v308_v7  ;;  %245 = vset.pattern.permute.xlu0 %v309_v8  ;;  %p283_p12 = pnand %p282_p11, %p276_p8 }
  0x23   :  { %98 = vperm.xlu1 %243, %v27_v2   ;;  %118 = vperm.xlu0 %245, %v27_v2  }
  0x27   :  { %244 = vset.pattern.permute.xlu1 %v310_v9  ;;  %248 = vset.pattern.permute.xlu0 %v311_v10 }
  0x28   :  { %108 = vperm.xlu1 %244, %v27_v2   ;;  %148 = vperm.xlu0 %248, %v27_v2  }
  0x2c   :  { %246 = vset.pattern.permute.xlu1 %v312_v11  ;;  %251 = vset.pattern.permute.xlu0 %v313_v12 }
  0x2d   :  { %128 = vperm.xlu1 %246, %v27_v2   ;;  %178 = vperm.xlu0 %251, %v27_v2  }
  0x31   :  { %247 = vset.pattern.permute.xlu1 %v314_v13 }
  0x32   :  { %138 = vperm.xlu1 %247, %v27_v2  }
  0x36   :  { %249 = vset.pattern.permute.xlu1 %v315_v14 }
  0x37   :  { %158 = vperm.xlu1 %249, %v27_v2  }
  0x3b   :  { %250 = vset.pattern.permute.xlu1 %v316_v15 }
  0x3c   :  { %168 = vperm.xlu1 %250, %v27_v2  }
  0x40   :  { %252 = vset.pattern.permute.xlu1 %v317_v16 }
  0x41   :  { %32 = vperm.xlu1 %252, %v27_v2  }
  0x93   :  { %v59_v18 = vpop.permute.xlu1 %58  ;;  %v39_v19 = vpop.permute.xlu0 %38 }
  0x94   :  { %v41_v20 = vmul.f32 %v39_v19, %v29_v17  ;;  %v61_v21 = vmul.f32 %v59_v18, %v29_v17 }
  0x96   :  { %43 = vrot.lane.b32.xlu1 %v41_v20, %s318_s26 }
  0x98   :  { %v69_v22 = vpop.permute.xlu1 %68  ;;  %v49_v23 = vpop.permute.xlu0 %48 }
  0x99   :  { %v51_v24 = vmul.f32 %v49_v23, %v29_v17  ;;  %v71_v25 = vmul.f32 %v69_v22, %v29_v17 }
  0x9a   :  { %63 = vrot.lane.b32.xlu1 %v61_v21, %s319_s27 }
  0x9b   :  { %53 = vrot.lane.b32.xlu0 %v51_v24, %s320_s28 }
  0x9d   :  { %v79_v26 = vpop.permute.xlu1 %78  ;;  %v89_v27 = vpop.permute.xlu0 %88 }
  0x9e   :  { %v81_v28 = vmul.f32 %v79_v26, %v29_v17  ;;  %v91_v29 = vmul.f32 %v89_v27, %v29_v17 }
  0x9f   :  { %73 = vrot.lane.b32.xlu0 %v71_v25, %s321_s29 }
  0xa0   :  { %83 = vrot.lane.b32.xlu1 %v81_v28, %s322_s2 }
  0xa2   :  { %v99_v30 = vpop.permute.xlu1 %98  ;;  %v119_v31 = vpop.permute.xlu0 %118 }
  0xa3   :  { %v101_v32 = vmul.f32 %v99_v30, %v29_v17  ;;  %93 = vrot.lane.b32.xlu0 %v91_v29, %s323_s30  ;;  %v121_v33 = vmul.f32 %v119_v31, %v29_v17 }
  0xa5   :  { %103 = vrot.lane.b32.xlu1 %v101_v32, %s324_s4 }
  0xa7   :  { %v109_v34 = vpop.permute.xlu1 %108  ;;  %v149_v37 = vpop.permute.xlu0 %148 }
  0xa8   :  { %v111_v35 = vmul.f32 %v109_v34, %v29_v17  ;;  %v151_v39 = vmul.f32 %v149_v37, %v29_v17 }
  0xa9   :  { %123 = vrot.lane.b32.xlu1 %v121_v33, %s325_s5 }
  0xaa   :  { %113 = vrot.lane.b32.xlu0 %v111_v35, %s326_s6 }
  0xac   :  { %v129_v36 = vpop.permute.xlu1 %128  ;;  %v179_v43 = vpop.permute.xlu0 %178 }
  0xad   :  { %v131_v38 = vmul.f32 %v129_v36, %v29_v17  ;;  %v181_v45 = vmul.f32 %v179_v43, %v29_v17 }
  0xaf   :  { %133 = vrot.lane.b32.xlu0 %v131_v38, %s327_s7 }
  0xb1   :  { %v139_v40 = vpop.permute.xlu1 %138 }
  0xb2   :  { %v141_v41 = vmul.f32 %v139_v40, %v29_v17 }
  0xb3   :  { %153 = vrot.lane.b32.xlu0 %v151_v39, %s328_s8 }
  0xb4   :  { %143 = vrot.lane.b32.xlu1 %v141_v41, %s329_s9 }
  0xb6   :  { %v159_v42 = vpop.permute.xlu1 %158 }
  0xb7   :  { %v161_v44 = vmul.f32 %v159_v42, %v29_v17 }
  0xb9   :  { %163 = vrot.lane.b32.xlu1 %v161_v44, %s330_s10 }
  0xbb   :  { %v169_v46 = vpop.permute.xlu1 %168 }
  0xbc   :  { %v171_v47 = vmul.f32 %v169_v46, %v29_v17 }
  0xbd   :  { %183 = vrot.lane.b32.xlu1 %v181_v45, %s331_s11 }
  0xbe   :  { %173 = vrot.lane.b32.xlu0 %v171_v47, %s332_s12 }
  0xc0   :  { %v33_v48 = vpop.permute.xlu1 %32 }
  0xc1   :  { %v35_v49 = vmul.f32 %v33_v48, %v29_v17 }
  0xc3   :  { %v36_v51 = vadd.f32 %v35_v49, %v28_v50 }
 0x108   :  { %v44_v52 = vpop.permute.xlu1 %43 }
 0x109   :  { %v46_v53 = vadd.f32 %v44_v52, %v36_v51 }
 0x10c   :  { %v64_v55 = vpop.permute.xlu1 %63 }
 0x10d   :  { %v54_v54 = vpop.permute.xlu0 %53 }
 0x10e   :  { %v56_v56 = vadd.f32 %v54_v54, %v46_v53 }
 0x110   :  { %v66_v57 = vadd.f32 %v64_v55, %v56_v56 }
 0x111   :  { %v74_v58 = vpop.permute.xlu0 %73 }
 0x112   :  { %v76_v59 = vadd.f32 %v74_v58, %v66_v57  ;;  %v84_v60 = vpop.permute.xlu1 %83 }
 0x114   :  { %v86_v61 = vadd.f32 %v84_v60, %v76_v59 }
 0x115   :  { %v94_v62 = vpop.permute.xlu0 %93 }
 0x116   :  { %v96_v63 = vadd.f32 %v94_v62, %v86_v61 }
 0x117   :  { %v104_v0 = vpop.permute.xlu1 %103 }
 0x118   :  { %v106_v1 = vadd.f32 %v104_v0, %v96_v63 }
 0x11b   :  { %v124_v4 = vpop.permute.xlu1 %123 }
 0x11c   :  { %v114_v2 = vpop.permute.xlu0 %113 }
 0x11d   :  { %v116_v3 = vadd.f32 %v114_v2, %v106_v1 }
 0x11f   :  { %v126_v5 = vadd.f32 %v124_v4, %v116_v3 }
 0x121   :  { %v134_v6 = vpop.permute.xlu0 %133 }
 0x122   :  { %v136_v7 = vadd.f32 %v134_v6, %v126_v5 }
 0x125   :  { %v154_v10 = vpop.permute.xlu0 %153 }
 0x126   :  { %v144_v8 = vpop.permute.xlu1 %143 }
 0x127   :  { %v146_v9 = vadd.f32 %v144_v8, %v136_v7 }
 0x129   :  { %v156_v11 = vadd.f32 %v154_v10, %v146_v9 }
 0x12b   :  { %v164_v12 = vpop.permute.xlu1 %163 }
 0x12c   :  { %v166_v13 = vadd.f32 %v164_v12, %v156_v11 }
 0x12f   :  { %v184_v15 = vpop.permute.xlu1 %183 }
 0x130   :  { %v174_v14 = vpop.permute.xlu0 %173 }
 0x131   :  { %v176_v16 = vadd.f32 %v174_v14, %v166_v13 }
 0x133   :  { %v186_v17 = vadd.f32 %v184_v15, %v176_v16 }
 0x135   :  { %188 = vst.msk [vmem:[#allocation5] sm:$0x3] %vm187_vm0, %v186_v17 }
 0x136   :  { %286 = shalt.err (!%p283_p12)
}
 0x137   :  { %s287_s18 = scalar_lea.hbm %s387_s3, 32 }
 0x138   :  { %p288_p13 = scmp.ne.s32.totalorder %s387_s3, %s287_s18  ;;  %p291_p0 = scmp.lt.u32.totalorder %s287_s18, %s387_s3 }
 0x13a   :  { %p293_p1 = pnand %p291_p0, %p288_p13 }
 0x13c   :  { %296 = shalt.err (!%p293_p1)
}
 0x13d   :  { %198 = dma.vmem_to_hbm [thread:$0]  %s196_s14, 32, %s387_s3, [#allocation4]  }
 0x13e   :  { %299 = dma.done.wait [#allocation4], 32  }
 0x13f   :  { %300 = vsyncadd [#allocation4], 4294967264 }
 0x140   :  { %202 = vsyncpa [#allocation3], 1 }
 0x141   :  { %203 = vsyncpa [#allocation4], 1 }

</bundles_post_ra>
